<compile_context>
chip_gen: v5e
topology: v5e:2x2
jax: 0.10.0
libtpu: 0.0.40
codegen_flags: <defaults>
</compile_context>

<pallas_src>
import functools

import jax
import jax.numpy as jnp
import numpy as np
from jax.experimental import pallas as pl
from jax.experimental.pallas import tpu as pltpu


def _neighbor_mask_kernel(pos_rows_ref, pos_cols_ref, mask_ref, *, cutoff2, n_valid):
    """One grid step produces a (tm, tn) int8 tile of the neighbor mask."""
    i = pl.program_id(0)
    j = pl.program_id(1)

    a = pos_rows_ref[...].astype(jnp.float32)   # (tm, 3)  row-tile of atoms
    b = pos_cols_ref[...].astype(jnp.float32)   # (3, tn)  column-tile of atoms

    tm = a.shape[0]
    tn = b.shape[1]

    # Per-component squared differences on the VPU (no MXU, no cancellation).
    dx = a[:, 0:1] - b[0:1, :]                  # (tm, tn)
    dy = a[:, 1:2] - b[1:2, :]
    dz = a[:, 2:3] - b[2:3, :]
    d2 = dx * dx + dy * dy + dz * dz

    row_ids = i * tm + jax.lax.broadcasted_iota(jnp.int32, (tm, tn), 0)
    col_ids = j * tn + jax.lax.broadcasted_iota(jnp.int32, (tm, tn), 1)

    # dist < cutoff  <=>  d2 < cutoff^2 ; diagonal forced False; padding masked.
    mask = d2 < jnp.float32(cutoff2)
    mask = jnp.logical_and(mask, row_ids != col_ids)
    mask = jnp.logical_and(mask, row_ids < n_valid)
    mask = jnp.logical_and(mask, col_ids < n_valid)

    mask_ref[...] = mask.astype(jnp.int8)


def _pick_tile(n_pad, target):
    """Largest tile <= target that divides n_pad (n_pad is a multiple of 128)."""
    t = min(target, n_pad)
    while n_pad % t != 0:
        t -= 128
    return t


def _neighbor_mask(positions, cutoff, *, tm_target=256, tn_target=512):
    """positions: (N, 3). Returns the (N, N) bool neighbor mask."""
    n = positions.shape[0]
    n_pad = ((n + 127) // 128) * 128

    tm = _pick_tile(n_pad, tm_target)
    tn = _pick_tile(n_pad, tn_target)

    pos_f32 = positions.astype(jnp.float32)
    pos_pad = jnp.zeros((n_pad, 3), jnp.float32).at[:n].set(pos_f32)
    pos_pad_t = pos_pad.T                       # (3, n_pad), lane-dense columns

    kernel = functools.partial(
        _neighbor_mask_kernel,
        cutoff2=float(cutoff) * float(cutoff),
        n_valid=int(n),
    )

    mask_i8 = pl.pallas_call(
        kernel,
        out_shape=jax.ShapeDtypeStruct((n_pad, n_pad), jnp.int8),
        grid=(n_pad // tm, n_pad // tn),
        in_specs=[
            pl.BlockSpec((tm, 3), lambda i, j: (i, 0)),   # row tile of atoms
            pl.BlockSpec((3, tn), lambda i, j: (0, j)),   # column tile of atoms
        ],
        out_specs=pl.BlockSpec((tm, tn), lambda i, j: (i, j)),
        compiler_params=pltpu.CompilerParams(
            dimension_semantics=("parallel", "parallel"),
        ),
    )(pos_pad, pos_pad_t)

    return mask_i8[:n, :n].astype(bool)


class NeighborListPallas:
    """JAX/Pallas port of TorchNeighborList (open-boundary / box=None path)."""

    def __init__(self, cutoff: float):
        self.cutoff = float(cutoff)
        # buffer from __init__: cartesian_prod(arange(-1,2)^3) -> (27, 3) int32
        r = jnp.arange(-1, 2, dtype=jnp.int32)
        gi, gj, gk = jnp.meshgrid(r, r, r, indexing="ij")
        self.disp_mat = jnp.stack(
            [gi.reshape(-1), gj.reshape(-1), gk.reshape(-1)], axis=-1
        )
        self.pairs = jnp.empty((1, 2), dtype=jnp.int32)
        self.buffer_scales = jnp.empty((1,), dtype=jnp.int32)
        self.ds = jnp.empty((1,), dtype=jnp.float32)

    def forward(self, positions, box=None):
        if box is not None:
            # TODO(synk): PBC branch (stable sort / unique_consecutive / nonzero
            # with data-dependent output shapes) has no clean Pallas equivalent.
            raise NotImplementedError("PBC path not translated")

        mask = _neighbor_mask(positions, self.cutoff)      # (N, N) bool

        # torch.argwhere on the mask (dynamic output shape -> plain JAX, eager)
        pairs = jnp.argwhere(mask).astype(jnp.int32)       # (P, 2)

        # pairs_buffer_scales: 1 where i < j else 0
        dp = pairs[:, 0] - pairs[:, 1]
        buffer_scales = jnp.where(dp < 0, 1, 0).astype(jnp.int32)

        # pairs_ds (pbc_flag=False): ||rj - ri||
        pos_f32 = positions.astype(jnp.float32)
        ri = pos_f32[pairs[:, 0]]
        rj = pos_f32[pairs[:, 1]]
        ds = jnp.linalg.norm(rj - ri, axis=1)

        self.pairs = pairs
        self.buffer_scales = buffer_scales
        self.ds = ds
        return pairs

    __call__ = forward


if __name__ == "__main__":
    key = jax.random.PRNGKey(0)
    N = 64
    cutoff = 2.5
    # random atom positions inside a 6 x 6 x 6 box
    positions = jax.random.uniform(
        key, (N, 3), dtype=jnp.float32, minval=0.0, maxval=6.0
    )

    nblist = NeighborListPallas(cutoff)
    pairs = nblist(positions, box=None)
    pairs = jax.block_until_ready(pairs)
    ds = jax.block_until_ready(nblist.ds)
    bs = jax.block_until_ready(nblist.buffer_scales)

    # --- sanity check against a pure-NumPy float64 reference ----------------
    pos_np = np.asarray(positions, dtype=np.float64)
    diff = pos_np[:, None, :] - pos_np[None, :, :]
    dist_ref = np.sqrt(np.sum(diff * diff, axis=-1))
    mask_ref = (dist_ref < cutoff) & (~np.eye(N, dtype=bool))

    mask_ker = np.asarray(jax.block_until_ready(_neighbor_mask(positions, cutoff)))

    disagree = mask_ker != mask_ref
    if disagree.any():
        # only allowed to disagree at distances numerically on the cutoff edge
        assert np.all(np.abs(dist_ref[disagree] - cutoff) < 1e-4), (
            "mask disagrees away from the cutoff boundary"
        )

    # pairs shape / content sanity
    pairs_np = np.asarray(pairs)
    assert pairs_np.ndim == 2 and pairs_np.shape[1] == 2
    assert bs.shape == (pairs_np.shape[0],)
    assert ds.shape == (pairs_np.shape[0],)
    assert pairs_np.shape[0] > 0
    assert np.all(pairs_np[:, 0] != pairs_np[:, 1])
    assert np.all(pairs_np < N) and np.all(pairs_np >= 0)

    # emitted pairs must be below the cutoff (up to the float32 edge)
    ds_chk = dist_ref[pairs_np[:, 0], pairs_np[:, 1]]
    assert np.all(ds_chk < cutoff + 1e-4)
    np.testing.assert_allclose(np.asarray(ds), ds_chk, rtol=1e-4, atol=1e-4)

    # buffer_scales semantics: 1 iff i < j
    np.testing.assert_array_equal(
        np.asarray(bs), (pairs_np[:, 0] < pairs_np[:, 1]).astype(np.int32)
    )

    print("KERNEL_OK")
</pallas_src>

<mosaic_0001>
module attributes {stable_mosaic.version = 11 : i64} {
  func.func @_neighbor_mask_kernel(%arg0: i32, %arg1: i32, %arg2: memref<128x3xf32, #tpu.memory_space<vmem>>, %arg3: memref<3x128xf32, #tpu.memory_space<vmem>>, %arg4: memref<128x128xi8, #tpu.memory_space<vmem>>) attributes {dimension_semantics = [#tpu.dimension_semantics<parallel>, #tpu.dimension_semantics<parallel>], iteration_bounds = array<i64: 1, 1>, scalar_prefetch = 0 : i64, scratch_operands = 0 : i64, tpu.core_type = #tpu.core_type<tc>, window_params = [{transform_indices = @transform_0, window_bounds = array<i64: 128, 3>}, {transform_indices = @transform_1, window_bounds = array<i64: 3, 128>}, {transform_indices = @transform_2, window_bounds = array<i64: 128, 128>}]} {
    %c0 = arith.constant 0 : index
    %c0_0 = arith.constant 0 : index
    %0 = vector.load %arg2[%c0, %c0_0] : memref<128x3xf32, #tpu.memory_space<vmem>>, vector<128x3xf32>
    %c0_1 = arith.constant 0 : index
    %c0_2 = arith.constant 0 : index
    %1 = vector.load %arg3[%c0_1, %c0_2] : memref<3x128xf32, #tpu.memory_space<vmem>>, vector<3x128xf32>
    %2 = vector.extract_strided_slice %0 {offsets = [0, 0], sizes = [128, 1], strides = [1, 1]} : vector<128x3xf32> to vector<128x1xf32>
    %3 = vector.extract_strided_slice %1 {offsets = [0, 0], sizes = [1, 128], strides = [1, 1]} : vector<3x128xf32> to vector<1x128xf32>
    %4 = vector.broadcast %2 : vector<128x1xf32> to vector<128x128xf32>
    %5 = vector.broadcast %3 : vector<1x128xf32> to vector<128x128xf32>
    %6 = arith.subf %4, %5 : vector<128x128xf32>
    %7 = vector.extract_strided_slice %0 {offsets = [0, 1], sizes = [128, 1], strides = [1, 1]} : vector<128x3xf32> to vector<128x1xf32>
    %8 = vector.extract_strided_slice %1 {offsets = [1, 0], sizes = [1, 128], strides = [1, 1]} : vector<3x128xf32> to vector<1x128xf32>
    %9 = vector.broadcast %7 : vector<128x1xf32> to vector<128x128xf32>
    %10 = vector.broadcast %8 : vector<1x128xf32> to vector<128x128xf32>
    %11 = arith.subf %9, %10 : vector<128x128xf32>
    %12 = vector.extract_strided_slice %0 {offsets = [0, 2], sizes = [128, 1], strides = [1, 1]} : vector<128x3xf32> to vector<128x1xf32>
    %13 = vector.extract_strided_slice %1 {offsets = [2, 0], sizes = [1, 128], strides = [1, 1]} : vector<3x128xf32> to vector<1x128xf32>
    %14 = vector.broadcast %12 : vector<128x1xf32> to vector<128x128xf32>
    %15 = vector.broadcast %13 : vector<1x128xf32> to vector<128x128xf32>
    %16 = arith.subf %14, %15 : vector<128x128xf32>
    %17 = arith.mulf %6, %6 : vector<128x128xf32>
    %18 = arith.mulf %11, %11 : vector<128x128xf32>
    %19 = arith.addf %17, %18 : vector<128x128xf32>
    %20 = arith.mulf %16, %16 : vector<128x128xf32>
    %21 = arith.addf %19, %20 : vector<128x128xf32>
    %c128_i32 = arith.constant 128 : i32
    %22 = arith.muli %arg0, %c128_i32 : i32
    %23 = tpu.iota {dimensions = array<i32: 0>} : vector<128x128xi32>
    %24 = vector.broadcast %22 : i32 to vector<128x128xi32>
    %25 = arith.addi %24, %23 : vector<128x128xi32>
    %c128_i32_3 = arith.constant 128 : i32
    %26 = arith.muli %arg1, %c128_i32_3 : i32
    %27 = tpu.iota {dimensions = array<i32: 1>} : vector<128x128xi32>
    %28 = vector.broadcast %26 : i32 to vector<128x128xi32>
    %29 = arith.addi %28, %27 : vector<128x128xi32>
    %cst = arith.constant 6.250000e+00 : f32
    %30 = vector.broadcast %cst : f32 to vector<128x128xf32>
    %31 = arith.cmpf olt, %21, %30 : vector<128x128xf32>
    %32 = arith.cmpi ne, %25, %29 : vector<128x128xi32>
    %33 = arith.andi %31, %32 : vector<128x128xi1>
    %c64_i32 = arith.constant 64 : i32
    %34 = vector.broadcast %c64_i32 : i32 to vector<128x128xi32>
    %35 = arith.cmpi slt, %25, %34 : vector<128x128xi32>
    %36 = arith.andi %33, %35 : vector<128x128xi1>
    %c64_i32_4 = arith.constant 64 : i32
    %37 = vector.broadcast %c64_i32_4 : i32 to vector<128x128xi32>
    %38 = arith.cmpi slt, %29, %37 : vector<128x128xi32>
    %39 = arith.andi %36, %38 : vector<128x128xi1>
    %40 = arith.extui %39 : vector<128x128xi1> to vector<128x128xi8>
    %c0_5 = arith.constant 0 : index
    %c0_6 = arith.constant 0 : index
    %41 = vector.load %arg4[%c0_5, %c0_6] : memref<128x128xi8, #tpu.memory_space<vmem>>, vector<128x128xi8>
    tpu.vector_store %arg4[%c0_5, %c0_6], %40 {strides = array<i32>} : memref<128x128xi8, #tpu.memory_space<vmem>>, vector<128x128xi8>,
    return
  }
  func.func @transform_0(%arg0: i32, %arg1: i32) -> (i32, i32) {
    %c0_i32 = arith.constant 0 : i32
    %c0_i32_0 = arith.constant 0 : i32
    return %arg0, %c0_i32 : i32, i32
  }
  func.func @transform_1(%arg0: i32, %arg1: i32) -> (i32, i32) {
    %c0_i32 = arith.constant 0 : i32
    %c0_i32_0 = arith.constant 0 : i32
    return %c0_i32, %arg1 : i32, i32
  }
  func.func @transform_2(%arg0: i32, %arg1: i32) -> (i32, i32) {
    %c0_i32 = arith.constant 0 : i32
    return %arg0, %arg1 : i32, i32
  }
}

</mosaic_0001>

<bundles_post_ra>
// kernel: tpu_custom_call.1
= control target key start
LH: loop header
LB: loop body
LE: loop exit
PB: predicated region body
PF: predicated region fallthrough
CT: control target
= control target key end

     0   :  { %v599_v3 = vmov 0   ;;  %s785_s0 = inlined_call_operand.vmem [shape: f32[128,3], index: 0, kind: input, shape index: {}]   ;;  %s786_s1 = inlined_call_operand.vmem [shape: f32[3,128], index: 1, kind: input, shape index: {}]   ;;  %s787_s2 = inlined_call_operand.hbm [shape: s8[128,128], index: 2, kind: output, shape index: {}]  }
   0x1   :  { %v18_v0 = vld [vmem:[%s785_s0 + $0x20] sm:$0xff]  ;;  %v16_v1 = vld [vmem:[%s785_s0 + $0x10] sm:$0xff]  ;;  %566 = vset.pattern.permute.xlu2 %v599_v3  ;;  %565 = vset.pattern.permute.xlu1 %v599_v3 }
   0x2   :  { %v14_v2 = vld [vmem:[%s785_s0] sm:$0xff]  ;;  %564 = vset.pattern.permute.xlu0 %v599_v3  ;;  %53 = vperm.xlu2 %566, %v18_v0  }
   0x3   :  { %7 = vsyncpa [#allocation3], 0  ;;  %43 = vperm.xlu1 %565, %v16_v1   ;;  %33 = vperm.xlu0 %564, %v14_v2   ;;  %v19_v4 = vld [vmem:[%s785_s0 + $0x28] sm:$0xff]  ;;  %v17_v5 = vld [vmem:[%s785_s0 + $0x18] sm:$0xff]  ;;  %v600_v9 = vmov 1   ;;  %v601_v10 = vmov 2   ;;  %v371_v39 = vlaneseq }
   0x4   :  { %v15_v6 = vld [vmem:[%s785_s0 + $0x8] sm:$0xff]  ;;  %v21_v7 = vld [vmem:[%s785_s0 + $0x38] sm:$0xff]  ;;  %v20_v8 = vld [vmem:[%s785_s0 + $0x30] sm:$0xff]  ;;  %vm602_vm0 = vmmov 0   ;;  %s545_s29 = sshll.u32 %s787_s2, 4  ;;  %s604_s30 = smov 128   ;;  %s546_s29 = int_to_ptr.hbm [resolvable:$true] %s545_s29 }
   0x5   :  { %v30_v25 = vld [vmem:[%s786_s1] sm:$0x7]  ;;  %v673_v48 = vshrl.u32 %v371_v39, 7  ;;  %v675_v51 = vand.u32 127, %v371_v39  ;;  %vm519_vm1 = vmpackc.low %vm602_vm0, %vm602_vm0  ;;  %s603_s1 = smov [#allocation2]   ;;  %s605_s3 = smov 8  }
   0x6   :  { %v657_v26 = vperm.slane %v30_v25, 0  ;;  %v659_v27 = vperm.slane %v30_v25, 1  ;;  %v663_v30 = vperm.slane %v30_v25, 2  ;;  %s543_s26 = sshll.u32 %s603_s1, 4  ;;  %s544_s26 = int_to_ptr.vmem [resolvable:$true] %s543_s26 }
   0x7   :  { %v373_v55 = vadd.s32 8, %v673_v48  ;;  %v375_v59 = vadd.s32 24, %v673_v48  ;;  %vm426_vm2 = vcmp.ne.s32.totalorder %v673_v48, %v675_v51  ;;  %vm490_vm4 = vcmp.lt.s32.totalorder %v675_v51, 64 }
   0x9   :  { %vm427_vm3 = vcmp.ne.s32.totalorder %v373_v55, %v675_v51  ;;  %vm429_vm6 = vcmp.ne.s32.totalorder %v375_v59, %v675_v51 }
   0xa   :  { %58 = vperm.xlu2 %566, %v19_v4  }
   0xb   :  { %48 = vperm.xlu1 %565, %v17_v5   ;;  %38 = vperm.xlu0 %564, %v15_v6  }
  0x12   :  { %567 = vset.pattern.permute.xlu2 %v600_v9 }
  0x13   :  { %68 = vperm.xlu1 %565, %v21_v7   ;;  %63 = vperm.xlu0 %564, %v20_v8  }
  0x14   :  { %129 = vperm.xlu2 %567, %v14_v2  }
  0x1b   :  { %569 = vset.pattern.permute.xlu1 %v600_v9  ;;  %568 = vset.pattern.permute.xlu0 %v600_v9 }
  0x1c   :  { %137 = vperm.xlu1 %569, %v16_v1   ;;  %141 = vperm.xlu2 %567, %v17_v5  }
  0x1d   :  { %133 = vperm.xlu0 %568, %v15_v6  }
  0x24   :  { %145 = vperm.xlu1 %569, %v18_v0   ;;  %149 = vperm.xlu2 %567, %v19_v4  }
  0x25   :  { %153 = vperm.xlu0 %568, %v20_v8  }
  0x2c   :  { %157 = vperm.xlu1 %569, %v21_v7   ;;  %570 = vset.pattern.permute.xlu2 %v601_v10 }
  0x2d   :  { %571 = vset.pattern.permute.xlu0 %v601_v10  ;;  %210 = vperm.xlu2 %570, %v14_v2   ;;  %v521_v2 = vsel %vm519_vm1, 16711935, %v599_v3 }
  0x2e   :  { %214 = vperm.xlu0 %571, %v15_v6   ;;  %v523_v6 = vpack.c.b8 %v521_v2, %v521_v2 }
  0x30   :  { %vm524_vm10 = vnez %v523_v6 }
  0x34   :  { %572 = vset.pattern.permute.xlu1 %v601_v10 }
  0x35   :  { %218 = vperm.xlu1 %572, %v16_v1   ;;  %222 = vperm.xlu2 %570, %v17_v5  }
  0x36   :  { %234 = vperm.xlu0 %571, %v20_v8  }
  0x3d   :  { %226 = vperm.xlu1 %572, %v18_v0   ;;  %230 = vperm.xlu2 %570, %v19_v4  }
  0x45   :  { %238 = vperm.xlu1 %572, %v21_v7  }
  0x5c   :  { %v648_v11 = vpop.permute.xlu2 %53 }
  0x64   :  { %v59_v12 = vpop.permute.xlu2 %58 }
  0x65   :  { %v117_v63 = vsub.f32 %v59_v12, %v657_v26  ;;  %v374_v12 = vadd.s32 16, %v673_v48 }
  0x67   :  { %v295_v25 = vmul.f32 %v117_v63, %v117_v63  ;;  %vm428_vm15 = vcmp.ne.s32.totalorder %v374_v12, %v675_v51 }
  0x6e   :  { %v130_v13 = vpop.permute.xlu2 %129 }
  0x6f   :  { %v193_v28 = vsub.f32 %v130_v13, %v659_v27 }
  0x71   :  { %v306_v36 = vmul.f32 %v193_v28, %v193_v28 }
  0x75   :  { %v44_v14 = vpop.permute.xlu1 %43  ;;  %v34_v15 = vpop.permute.xlu0 %33 }
  0x76   :  { %v142_v16 = vpop.permute.xlu2 %141  ;;  %v112_v29 = vsub.f32 %v34_v15, %v657_v26  ;;  %v114_v0 = vsub.f32 %v44_v14, %v657_v26 }
  0x77   :  { %v196_v34 = vsub.f32 %v142_v16, %v659_v27 }
  0x78   :  { %v290_v37 = vmul.f32 %v112_v29, %v112_v29  ;;  %v292_v9 = vmul.f32 %v114_v0, %v114_v0 }
  0x79   :  { %v309_v42 = vmul.f32 %v196_v34, %v196_v34 }
  0x7a   :  { %v322_v45 = vadd.f32 %v306_v36, %v290_v37 }
  0x7d   :  { %v49_v17 = vpop.permute.xlu1 %48  ;;  %v39_v18 = vpop.permute.xlu0 %38 }
  0x7e   :  { %v150_v19 = vpop.permute.xlu2 %149  ;;  %v115_v35 = vsub.f32 %v49_v17, %v657_v26  ;;  %v113_v44 = vsub.f32 %v39_v18, %v657_v26 }
  0x7f   :  { %v198_v7 = vsub.f32 %v150_v19, %v659_v27  ;;  %v533_v19 = vsel %vm524_vm10, 16843009, %v599_v3 }
  0x80   :  { %v293_v43 = vmul.f32 %v115_v35, %v115_v35  ;;  %v291_v54 = vmul.f32 %v113_v44, %v113_v44  ;;  %537 = vst [vmem:[#allocation2 + $0x10] sm:$0xff] %v533_v19 }
  0x81   :  { %v311_v28 = vmul.f32 %v198_v7, %v198_v7  ;;  %538 = vst [vmem:[#allocation2 + $0x18] sm:$0xff] %v533_v19 }
  0x82   :  { %v325_v53 = vadd.f32 %v309_v42, %v293_v43  ;;  %v377_v42 = vadd.s32 40, %v673_v48 }
  0x85   :  { %v650_v20 = vpop.permute.xlu1 %68  ;;  %v652_v21 = vpop.permute.xlu0 %63 }
  0x86   :  { %v118_v29 = vsub.f32 %v652_v21, %v657_v26 }
  0x87   :  { %v211_v22 = vpop.permute.xlu2 %210 }
  0x88   :  { %v274_v38 = vsub.f32 %v211_v22, %v663_v30  ;;  %v116_v22 = vsub.f32 %v648_v11, %v657_v26  ;;  %v296_v39 = vmul.f32 %v118_v29, %v118_v29 }
  0x8a   :  { %v338_v46 = vmul.f32 %v274_v38, %v274_v38  ;;  %v294_v37 = vmul.f32 %v116_v22, %v116_v22  ;;  %v327_v38 = vadd.f32 %v311_v28, %v295_v25 }
  0x8c   :  { %v354_v57 = vadd.f32 %v338_v46, %v322_v45 }
  0x8e   :  { %v138_v23 = vpop.permute.xlu1 %137  ;;  %vm410_vm5 = vcmp.lt.f32.partialorder %v354_v57, 6.25 }
  0x8f   :  { %v134_v24 = vpop.permute.xlu0 %133  ;;  %v223_v33 = vpop.permute.xlu2 %222  ;;  %v195_v58 = vsub.f32 %v138_v23, %v659_v27  ;;  %vm700_vm11 = vmand %vm410_vm5, %vm426_vm2 }
  0x90   :  { %v194_v40 = vsub.f32 %v134_v24, %v659_v27  ;;  %v277_v41 = vsub.f32 %v223_v33, %v663_v30  ;;  %vm728_vm14 = vmand %vm700_vm11, %vm490_vm4 }
  0x91   :  { %v308_v4 = vmul.f32 %v195_v58, %v195_v58  ;;  %v119_v58 = vsub.f32 %v650_v20, %v657_v26  ;;  %v379_v20 = vadd.s32 56, %v673_v48 }
  0x92   :  { %v307_v49 = vmul.f32 %v194_v40, %v194_v40  ;;  %v341_v50 = vmul.f32 %v277_v41, %v277_v41 }
  0x93   :  { %v324_v23 = vadd.f32 %v308_v4, %v292_v9 }
  0x94   :  { %v323_v60 = vadd.f32 %v307_v49, %v291_v54  ;;  %v357_v61 = vadd.f32 %v341_v50, %v325_v53  ;;  %v376_v49 = vadd.s32 32, %v673_v48 }
  0x96   :  { %v146_v31 = vpop.permute.xlu1 %145  ;;  %vm413_vm7 = vcmp.lt.f32.partialorder %v357_v61, 6.25  ;;  %v297_v61 = vmul.f32 %v119_v58, %v119_v58 }
  0x97   :  { %v154_v32 = vpop.permute.xlu0 %153  ;;  %v231_v5 = vpop.permute.xlu2 %230  ;;  %v197_v16 = vsub.f32 %v146_v31, %v659_v27  ;;  %vm445_vm12 = vmand %vm413_vm7, %vm429_vm6  ;;  %vm431_vm7 = vcmp.ne.s32.totalorder %v377_v42, %v675_v51 }
  0x98   :  { %v199_v17 = vsub.f32 %v154_v32, %v659_v27  ;;  %v279_v18 = vsub.f32 %v231_v5, %v663_v30  ;;  %vm735_vm0 = vmand %vm445_vm12, %vm490_vm4 }
  0x99   :  { %v310_v34 = vmul.f32 %v197_v16, %v197_v16 }
  0x9a   :  { %v312_v35 = vmul.f32 %v199_v17, %v199_v17  ;;  %v343_v36 = vmul.f32 %v279_v18, %v279_v18 }
  0x9b   :  { %v326_v44 = vadd.f32 %v310_v34, %v294_v37 }
  0x9c   :  { %v328_v45 = vadd.f32 %v312_v35, %v296_v39  ;;  %v359_v46 = vadd.f32 %v343_v36, %v327_v38 }
  0x9e   :  { %v671_v47 = vpop.permute.xlu1 %157  ;;  %vm415_vm10 = vcmp.lt.f32.partialorder %v359_v46, 6.25 }
  0x9f   :  { %v200_v50 = vsub.f32 %v671_v47, %v659_v27 }
  0xa0   :  { %v215_v52 = vpop.permute.xlu0 %214 }
  0xa1   :  { %v275_v56 = vsub.f32 %v215_v52, %v663_v30  ;;  %v313_v27 = vmul.f32 %v200_v50, %v200_v50 }
  0xa3   :  { %v339_v62 = vmul.f32 %v275_v56, %v275_v56  ;;  %v378_v56 = vadd.s32 48, %v673_v48 }
  0xa5   :  { %v355_v1 = vadd.f32 %v339_v62, %v323_v60  ;;  %vm432_vm12 = vcmp.ne.s32.totalorder %v378_v56, %v675_v51  ;;  %v329_v62 = vadd.f32 %v313_v27, %v297_v61 }
  0xa7   :  { %vm411_vm8 = vcmp.lt.f32.partialorder %v355_v1, 6.25  ;;  %v219_v8 = vpop.permute.xlu1 %218 }
  0xa8   :  { %vm690_vm9 = vmand %vm411_vm8, %vm427_vm3  ;;  %v276_v13 = vsub.f32 %v219_v8, %v663_v30  ;;  %v235_v14 = vpop.permute.xlu0 %234 }
  0xa9   :  { %vm719_vm13 = vmand %vm690_vm9, %vm490_vm4  ;;  %v280_v11 = vsub.f32 %v235_v14, %v663_v30  ;;  %vm430_vm9 = vcmp.ne.s32.totalorder %v376_v49, %v675_v51 }
  0xaa   :  { %v340_v24 = vmul.f32 %v276_v13, %v276_v13  ;;  %vm507_vm1 = vmpackc.low %vm719_vm13, %vm728_vm14 }
  0xab   :  { %v344_v40 = vmul.f32 %v280_v11, %v280_v11  ;;  %v509_v52 = vsel %vm507_vm1, 16711935, %v599_v3 }
  0xac   :  { %v356_v21 = vadd.f32 %v340_v24, %v324_v23 }
  0xad   :  { %v360_v57 = vadd.f32 %v344_v40, %v328_v45 }
  0xae   :  { %vm412_vm2 = vcmp.lt.f32.partialorder %v356_v21, 6.25 }
  0xaf   :  { %vm444_vm3 = vmand %vm412_vm2, %vm428_vm15  ;;  %v227_v41 = vpop.permute.xlu1 %226  ;;  %vm416_vm13 = vcmp.lt.f32.partialorder %v360_v57, 6.25 }
  0xb0   :  { %vm493_vm5 = vmand %vm444_vm3, %vm490_vm4  ;;  %v278_v43 = vsub.f32 %v227_v41, %v663_v30  ;;  %vm433_vm3 = vcmp.ne.s32.totalorder %v379_v20, %v675_v51 }
  0xb1   :  { %vm508_vm6 = vmpackc.low %vm735_vm0, %vm493_vm5 }
  0xb2   :  { %v510_v53 = vsel %vm508_vm6, 16711935, %v599_v3  ;;  %v342_v54 = vmul.f32 %v278_v43, %v278_v43  ;;  %vm447_vm15 = vmand %vm415_vm10, %vm431_vm7 }
  0xb3   :  { %v511_v55 = vpack.c.b8 %v510_v53, %v509_v52  ;;  %vm448_vm0 = vmand %vm416_vm13, %vm432_vm12 }
  0xb4   :  { %v358_v59 = vadd.f32 %v342_v54, %v326_v44  ;;  %vm496_vm2 = vmand %vm447_vm15, %vm490_vm4 }
  0xb5   :  { %vm512_vm8 = vnez %v511_v55  ;;  %vm497_vm5 = vmand %vm448_vm0, %vm490_vm4 }
  0xb6   :  { %v531_v47 = vsel %vm512_vm8, 16843009, %v599_v3  ;;  %vm414_vm11 = vcmp.lt.f32.partialorder %v358_v59, 6.25 }
  0xb7   :  { %535 = vst [vmem:[#allocation2] sm:$0xff] %v531_v47  ;;  %v239_v60 = vpop.permute.xlu1 %238  ;;  %vm446_vm14 = vmand %vm414_vm11, %vm430_vm9 }
  0xb8   :  { %v281_v26 = vsub.f32 %v239_v60, %v663_v30  ;;  %vm495_vm1 = vmand %vm446_vm14, %vm490_vm4 }
  0xb9   :  { %vm513_vm6 = vmpackc.low %vm496_vm2, %vm495_vm1 }
  0xba   :  { %v345_v63 = vmul.f32 %v281_v26, %v281_v26  ;;  %v515_v30 = vsel %vm513_vm6, 16711935, %v599_v3 }
  0xbc   :  { %v361_v0 = vadd.f32 %v345_v63, %v329_v62 }
  0xbe   :  { %vm417_vm8 = vcmp.lt.f32.partialorder %v361_v0, 6.25 }
  0xbf   :  { %vm449_vm9 = vmand %vm417_vm8, %vm433_vm3 }
  0xc0   :  { %vm498_vm7 = vmand %vm449_vm9, %vm490_vm4 }
  0xc1   :  { %vm514_vm10 = vmpackc.low %vm498_vm7, %vm497_vm5 }
  0xc2   :  { %v516_v48 = vsel %vm514_vm10, 16711935, %v599_v3 }
  0xc3   :  { %v517_v1 = vpack.c.b8 %v516_v48, %v515_v30 }
  0xc5   :  { %vm518_vm11 = vnez %v517_v1 }
  0xc6   :  { %v532_v2 = vsel %vm518_vm11, 16843009, %v599_v3 }
  0xc7   :  { %536 = vst [vmem:[#allocation2 + $0x8] sm:$0xff] %v532_v2 }
  0xc8   :  { %551 = dma.vmem_to_hbm [thread:$0]  %s544_s26, 512, %s546_s29, [#allocation3], %s604_s30, %s604_s30, %s605_s3  }
  0xc9   :  { %597 = dma.done.wait [#allocation3], 512  }
  0xca   :  { %598 = vsyncadd [#allocation3], 4294966784 }
  0xcb   :  { %556 = vsyncpa [#allocation3], 1 }

</bundles_post_ra>
